<compile_context>
chip_gen: v5e
topology: v5e:2x2
jax: 0.10.0
libtpu: 0.0.40
codegen_flags: <defaults>
</compile_context>

<pallas_src>
import warnings

import jax
import jax.numpy as jnp
from jax import lax
from jax.experimental import pallas as pl
from jax.experimental.pallas import tpu as pltpu

# ---- model dims (small, synthetic) ------------------------------------------
B, CIN, H, W = 2, 4, 16, 16
COUT = 8
KH = KW = 3
NUM_CLASSES = 10
BN_EPS = 1e-5

K_RAW = KH * KW * CIN          # 36 im2col lanes
K_BIAS = K_RAW                 # lane 36: constant 1.0 -> BN-shift/conv-bias row
K_USE = 48                     # pad K to a bf16 sublane-tile multiple (3 x 16)
C_PAD = 128                    # conv output channels padded to one lane vector
NC_PAD = 128                   # class logits padded to one lane vector
B_PAD = 8                      # sublane-dense output rows (>= B)
M_TOT = B * H * W              # 512 rows of im2col patches

_FLOPS = 2 * (M_TOT * K_USE * C_PAD + B_PAD * M_TOT * C_PAD + B_PAD * C_PAD * NC_PAD)
_BYTES = (M_TOT * K_USE * 2 + K_USE * C_PAD * 2 + B_PAD * M_TOT * 4
          + (C_PAD + B_PAD) * NC_PAD * 4 + B_PAD * NC_PAD * 4)


# ---- Pallas kernel: fused conv(im2col matmul) + BN + ReLU + GAP + Linear -----
def _model_fwd_kernel(patches_ref, wconv_ref, pool_ref, head_ref, out_ref):
    # Conv as ONE bf16 MXU matmul with f32 accumulation. BN scale is pre-folded
    # into the weight columns; BN shift (+conv bias) sits in the bias row that
    # the all-ones patch lane selects, so no scale/shift FMA is needed here.
    y = jnp.dot(patches_ref[...], wconv_ref[...],
                preferred_element_type=jnp.float32)            # (512, 128) f32
    y = jnp.maximum(y, 0.0)                                    # ReLU (f32)

    # Global average pool per batch element on the MXU:
    # (8, 512) @ (512, 128) -> (8, 128); rows >= B are zero.
    pooled = jnp.dot(pool_ref[...], y, preferred_element_type=jnp.float32)

    # Linear head + bias from the packed head slab (static, tile-aligned row
    # slices); one unmasked sublane-dense (8, 128) store.
    out_ref[...] = (jnp.dot(pooled, head_ref[:C_PAD, :],
                            preferred_element_type=jnp.float32)
                    + head_ref[C_PAD:, :])


def _pack_forward_params(params):
    """Parameter-only packing (hoisted out of forward; recomputed on update)."""
    # BN (eval) fold: out = scale*conv_out + shift, with conv bias included.
    gamma, beta = params['bn_gamma'], params['bn_beta']
    mean, var = params['bn_mean'], params['bn_var']
    scale = (gamma / jnp.sqrt(var + BN_EPS)).astype(jnp.float32)          # (COUT,)
    shift = (beta + (params['conv_b'] - mean) * scale).astype(jnp.float32)

    # Conv weight (COUT, CIN, KH, KW) -> im2col layout (KH*KW*CIN, COUT) with
    # the BN scale folded into each column; K ordering matches the patch
    # extraction below: k = (dy*KW + dx)*CIN + cin.  BN shift goes in the bias
    # row (K_BIAS).  Cast to bf16 (MXU-native); f32 accumulation in-kernel.
    w = jnp.transpose(params['conv_w'].astype(jnp.float32), (2, 3, 1, 0))
    w = w.reshape(K_RAW, COUT) * scale[None, :]
    w_conv = jnp.zeros((K_USE, C_PAD), jnp.float32)
    w_conv = w_conv.at[:K_RAW, :COUT].set(w)
    w_conv = w_conv.at[K_BIAS, :COUT].set(shift)
    w_conv = w_conv.astype(jnp.bfloat16)

    # Pooling matrix: sublane-dense (8, B*H*W); rows 0..B-1 are block-diagonal
    # 1/(H*W), rows >= B are zero.  Kept f32 (tiny; avoids an in-kernel cast).
    pool = jnp.zeros((B_PAD, M_TOT), jnp.float32)
    pool = pool.at[:B, :].set(
        jnp.kron(jnp.eye(B, dtype=jnp.float32),
                 jnp.full((1, H * W), 1.0 / (H * W), jnp.float32)))

    # Packed head slab: rows [:C_PAD] = fc weight (C_PAD, NC_PAD, padded),
    # rows [C_PAD:] = fc bias broadcast to the 8 output rows.  f32 so the bias
    # precision is untouched (review correctness note).
    head = jnp.zeros((C_PAD + B_PAD, NC_PAD), jnp.float32)
    head = head.at[:COUT, :NUM_CLASSES].set(
        jnp.transpose(params['fc_w'].astype(jnp.float32), (1, 0)))
    head = head.at[C_PAD:, :NUM_CLASSES].set(
        jnp.broadcast_to(params['fc_b'].astype(jnp.float32),
                         (B_PAD, NUM_CLASSES)))

    return {'w_conv': w_conv, 'pool': pool, 'head': head}


@jax.jit
def _forward_impl(x_nchw, packed):
    # NCHW -> NHWC, pad spatial by 1 (conv padding=1).
    x = jnp.transpose(x_nchw, (0, 2, 3, 1)).astype(jnp.float32)
    x_pad = jnp.pad(x, ((0, 0), (1, 1), (1, 1), (0, 0)))

    # im2col in the wrapper: 36 data lanes + one constant-1 bias lane + zero
    # pad lanes -> (512, 48), cast to bf16 (halves the dominant DMA).
    cols = [x_pad[:, dy:dy + H, dx:dx + W, :]
            for dy in range(KH) for dx in range(KW)]            # 9 x (B,H,W,CIN)
    cols.append(jnp.ones((B, H, W, 1), jnp.float32))            # bias lane
    cols.append(jnp.zeros((B, H, W, K_USE - K_RAW - 1), jnp.float32))
    patches = (jnp.concatenate(cols, axis=-1)
               .reshape(M_TOT, K_USE).astype(jnp.bfloat16))

    # Single gridless pallas_call: the whole problem lives in VMEM.
    out_pad = pl.pallas_call(
        _model_fwd_kernel,
        out_shape=jax.ShapeDtypeStruct((B_PAD, NC_PAD), jnp.float32),
        compiler_params=pltpu.CompilerParams(
            # let XLA fuse the im2col producer into the patches input DMA
            allow_input_fusion=[True, False, False, False]),
        cost_estimate=pl.CostEstimate(flops=_FLOPS, transcendentals=0,
                                      bytes_accessed=_BYTES),
    )(patches, packed['w_conv'], packed['pool'], packed['head'])

    return out_pad[:B, :NUM_CLASSES]


def model_forward(x_nchw, params, packed=None, bn_updated=False):
    """Forward pass of the averaged model (running_ensemble.forward)."""
    if not bn_updated:
        warnings.warn(
            'Running Mean and Variance of BatchNorm is not Updated!. Use with Care!')
    if packed is None:
        packed = _pack_forward_params(params)
    return _forward_impl(x_nchw, packed)


# ---- running_ensemble parameter logic (plain JAX glue) ----------------------
def make_params(key):
    ks = jax.random.split(key, 4)
    return {
        'conv_w': jax.random.normal(ks[0], (COUT, CIN, KH, KW), jnp.float32) * 0.1,
        'conv_b': jax.random.normal(ks[1], (COUT,), jnp.float32) * 0.1,
        'bn_gamma': jnp.ones((COUT,), jnp.float32),
        'bn_beta': jnp.zeros((COUT,), jnp.float32),
        'bn_mean': jnp.zeros((COUT,), jnp.float32),    # BN buffers (eval mode)
        'bn_var': jnp.ones((COUT,), jnp.float32),
        'fc_w': jax.random.normal(ks[2], (NUM_CLASSES, COUT), jnp.float32) * 0.1,
        'fc_b': jax.random.normal(ks[3], (NUM_CLASSES,), jnp.float32) * 0.1,
    }


class RunningEnsemble:
    """JAX port of running_ensemble: running average of member parameters."""

    PARAM_KEYS = ('conv_w', 'conv_b', 'bn_gamma', 'bn_beta', 'fc_w', 'fc_b')

    def __init__(self, params):
        self.params = {k: jnp.array(v) for k, v in params.items()}
        self.num_models = jnp.zeros((1,), jnp.float32)
        self.bn_updated = False
        self._packed = None            # cached kernel-ready parameter slabs

    def update(self, other_params):
        alpha = 1.0 / (self.num_models[0] + 1.0)
        for k in self.PARAM_KEYS:      # only learnable parameters are averaged
            self.params[k] = self.params[k] * (1.0 - alpha) + other_params[k] * alpha
        self.num_models = self.num_models + 1.0
        self.bn_updated = False
        self._packed = None            # invalidate packed cache

    # TODO(synk): update_bn() requires re-running a data loader through the model
    # in train mode to recompute BN running stats; no data loader here, so BN
    # buffers keep their deterministic init (mean=0, var=1).

    def forward(self, x_nchw):
        if self._packed is None:       # pack once per parameter change
            self._packed = _pack_forward_params(self.params)
        return model_forward(x_nchw, self.params, packed=self._packed,
                             bn_updated=self.bn_updated)


# ---- pure-JAX reference (for a correctness sanity check) --------------------
def reference_forward(x_nchw, params):
    x = x_nchw.astype(jnp.float32)
    y = lax.conv_general_dilated(
        x, params['conv_w'].astype(jnp.float32),
        window_strides=(1, 1), padding=((1, 1), (1, 1)),
        dimension_numbers=('NCHW', 'OIHW', 'NCHW'),
        precision=lax.Precision.HIGHEST)
    y = y + params['conv_b'].reshape(1, COUT, 1, 1)
    scale = params['bn_gamma'] / jnp.sqrt(params['bn_var'] + BN_EPS)
    shift = params['bn_beta'] - params['bn_mean'] * scale
    y = y * scale.reshape(1, COUT, 1, 1) + shift.reshape(1, COUT, 1, 1)
    y = jnp.maximum(y, 0.0)
    pooled = jnp.mean(y, axis=(2, 3))                  # (B, COUT)
    return (jnp.dot(pooled, params['fc_w'].T, precision=lax.Precision.HIGHEST)
            + params['fc_b'])                          # (B, NUM_CLASSES)


if __name__ == "__main__":
    key = jax.random.PRNGKey(0)
    k_x, k_m0, k_m1, k_m2 = jax.random.split(key, 4)

    # Deterministic example input (NCHW, like PyTorch).
    x = jax.random.normal(k_x, (B, CIN, H, W), jnp.float32)

    # Build the ensemble from 3 deterministic member models.
    ens = RunningEnsemble(make_params(k_m0))
    ens.update(make_params(k_m1))
    ens.update(make_params(k_m2))

    out = ens.forward(x)
    out = jax.block_until_ready(out)

    ref = reference_forward(x, ens.params)
    assert out.shape == (B, NUM_CLASSES)
    assert jnp.allclose(out, ref, rtol=1e-3, atol=1e-3), (out, ref)

    print("KERNEL_OK")
</pallas_src>

<mosaic_0001>
module attributes {stable_mosaic.version = 11 : i64} {
  func.func @_model_fwd_kernel(%arg0: memref<512x48xbf16, #tpu.memory_space<vmem>>, %arg1: memref<48x128xbf16, #tpu.memory_space<vmem>>, %arg2: memref<8x512xf32, #tpu.memory_space<vmem>>, %arg3: memref<136x128xf32, #tpu.memory_space<vmem>>, %arg4: memref<8x128xf32, #tpu.memory_space<vmem>>) attributes {dimension_semantics = [], scalar_prefetch = 0 : i64, scratch_operands = 0 : i64, tpu.core_type = #tpu.core_type<tc>} {
    %c0 = arith.constant 0 : index
    %c0_0 = arith.constant 0 : index
    %0 = vector.load %arg0[%c0, %c0_0] : memref<512x48xbf16, #tpu.memory_space<vmem>>, vector<512x48xbf16>
    %c0_1 = arith.constant 0 : index
    %c0_2 = arith.constant 0 : index
    %1 = vector.load %arg1[%c0_1, %c0_2] : memref<48x128xbf16, #tpu.memory_space<vmem>>, vector<48x128xbf16>
    %cst = arith.constant dense<0.000000e+00> : vector<512x128xf32>
    %2 = tpu.matmul %0, %1, %cst {dimension_numbers = #tpu.dot_dimension_numbers<[1], [0], [0], [1], [0, 0, 1, 1], [], []>} : vector<512x48xbf16>, vector<48x128xbf16>, vector<512x128xf32> -> vector<512x128xf32>
    %cst_3 = arith.constant 0.000000e+00 : f32
    %3 = vector.broadcast %cst_3 : f32 to vector<512x128xf32>
    %4 = arith.maximumf %2, %3 : vector<512x128xf32>
    %c0_4 = arith.constant 0 : index
    %c0_5 = arith.constant 0 : index
    %5 = vector.load %arg2[%c0_4, %c0_5] : memref<8x512xf32, #tpu.memory_space<vmem>>, vector<8x512xf32>
    %cst_6 = arith.constant dense<0.000000e+00> : vector<8x128xf32>
    %6 = tpu.matmul %5, %4, %cst_6 {dimension_numbers = #tpu.dot_dimension_numbers<[1], [0], [0], [1], [0, 0, 1, 1], [], []>} : vector<8x512xf32>, vector<512x128xf32>, vector<8x128xf32> -> vector<8x128xf32>
    %c0_7 = arith.constant 0 : index
    %c0_8 = arith.constant 0 : index
    %7 = vector.load %arg3[%c0_7, %c0_8] : memref<136x128xf32, #tpu.memory_space<vmem>>, vector<128x128xf32>
    %cst_9 = arith.constant dense<0.000000e+00> : vector<8x128xf32>
    %8 = tpu.matmul %6, %7, %cst_9 {dimension_numbers = #tpu.dot_dimension_numbers<[1], [0], [0], [1], [0, 0, 1, 1], [], []>} : vector<8x128xf32>, vector<128x128xf32>, vector<8x128xf32> -> vector<8x128xf32>
    %c128 = arith.constant 128 : index
    %c0_10 = arith.constant 0 : index
    %9 = vector.load %arg3[%c128, %c0_10] : memref<136x128xf32, #tpu.memory_space<vmem>>, vector<8x128xf32>
    %10 = arith.addf %8, %9 : vector<8x128xf32>
    %c0_11 = arith.constant 0 : index
    %c0_12 = arith.constant 0 : index
    %11 = vector.load %arg4[%c0_11, %c0_12] : memref<8x128xf32, #tpu.memory_space<vmem>>, vector<8x128xf32>
    tpu.vector_store %arg4[%c0_11, %c0_12], %10 {strides = array<i32>} : memref<8x128xf32, #tpu.memory_space<vmem>>, vector<8x128xf32>,
    return
  }
}

</mosaic_0001>

<bundles_post_ra>
// kernel: _forward_impl.1
= control target key start
LH: loop header
LB: loop body
LE: loop exit
PB: predicated region body
PF: predicated region fallthrough
CT: control target
= control target key end

     0   :  { %vm266_vm0 = vcmask 392192   ;;  %s1271_s1 = inlined_call_operand.vmem [shape: bf16[48,128], index: 1, kind: input, shape index: {}]   ;;  %s1272_s0 = inlined_call_operand.vmem [shape: bf16[512,48], index: 0, kind: input, shape index: {}]   ;;  %s1273_s2 = inlined_call_operand.vmem [shape: f32[8,512], index: 2, kind: input, shape index: {}]   ;;  %s1274_s3 = inlined_call_operand.vmem [shape: f32[136,128], index: 3, kind: input, shape index: {}]   ;;  %s1275_s4 = inlined_call_operand.vmem [shape: f32[8,128], index: 4, kind: output, shape index: {}]  }
   0x1   :  { %v928_v0 = vld [vmem:[%s1271_s1 + $0x10] sm:$0xff]  ;;  %v927_v1 = vld [vmem:[%s1271_s1 + $0x8] sm:$0xff]  ;;  %v926_v2 = vld [vmem:[%s1271_s1] sm:$0xff] }
   0x2   :  { %368 = vmatpush.bf16.msra.mxu0 %v928_v0  ;;  %929 = vmatpush.bf16.msra.mxu1 %v928_v0  ;;  %v894_v3 = vld [vmem:[%s1272_s0] sm:$0xff]  ;;  %v904_v4 = vld [vmem:[%s1272_s0 + $0x50] sm:$0xff]  ;;  %v895_v6 = vld [vmem:[%s1272_s0 + $0x8] sm:$0xff] }
   0x3   :  { %931 = vmatpush.bf16.msra.mxu3 %v928_v0  ;;  %930 = vmatpush.bf16.msra.mxu2 %v928_v0  ;;  %v916_v5 = vld [vmem:[%s1272_s0 + $0xb0] sm:$0xff]  ;;  %v905_v7 = vld [vmem:[%s1272_s0 + $0x58] sm:$0xff]  ;;  %v906_v10 = vld [vmem:[%s1272_s0 + $0x60] sm:$0xff] }
   0x4   :  { %v917_v8 = vld [vmem:[%s1272_s0 + $0xb8] sm:$0xff]  ;;  %v896_v9 = vld [vmem:[%s1272_s0 + $0x10] sm:$0xff]  ;;  %v918_v11 = vld [vmem:[%s1272_s0 + $0xc0] sm:$0xff] }
   0x5   :  { %v897_v12 = vld [vmem:[%s1272_s0 + $0x18] sm:$0xff]  ;;  %v907_v13 = vld [vmem:[%s1272_s0 + $0x68] sm:$0xff]  ;;  %v898_v16 = vld [vmem:[%s1272_s0 + $0x20] sm:$0xff] }
   0x6   :  { %369 = vmatpush.bf16.msra.mxu0 %v927_v1  ;;  %932 = vmatpush.bf16.msra.mxu1 %v927_v1  ;;  %v919_v14 = vld [vmem:[%s1272_s0 + $0xc8] sm:$0xff]  ;;  %v908_v17 = vld [vmem:[%s1272_s0 + $0x70] sm:$0xff]  ;;  %v909_v21 = vld [vmem:[%s1272_s0 + $0x78] sm:$0xff] }
   0x7   :  { %934 = vmatpush.bf16.msra.mxu3 %v927_v1  ;;  %933 = vmatpush.bf16.msra.mxu2 %v927_v1  ;;  %v911_v15 = vld [vmem:[%s1272_s0 + $0x88] sm:$0xff]  ;;  %v920_v18 = vld [vmem:[%s1272_s0 + $0xd0] sm:$0xff]  ;;  %v921_v22 = vld [vmem:[%s1272_s0 + $0xd8] sm:$0xff] }
   0x8   :  { %v912_v19 = vld [vmem:[%s1272_s0 + $0x90] sm:$0xff]  ;;  %v899_v20 = vld [vmem:[%s1272_s0 + $0x28] sm:$0xff]  ;;  %v913_v23 = vld [vmem:[%s1272_s0 + $0x98] sm:$0xff] }
   0x9   :  { %v900_v24 = vld [vmem:[%s1272_s0 + $0x30] sm:$0xff]  ;;  %v922_v25 = vld [vmem:[%s1272_s0 + $0xe0] sm:$0xff]  ;;  %v901_v27 = vld [vmem:[%s1272_s0 + $0x38] sm:$0xff] }
   0xa   :  { %370 = vmatpush.bf16.msra.mxu0 %v926_v2  ;;  %935 = vmatpush.bf16.msra.mxu1 %v926_v2  ;;  %v914_v26 = vld [vmem:[%s1272_s0 + $0xa0] sm:$0xff]  ;;  %v923_v28 = vld [vmem:[%s1272_s0 + $0xe8] sm:$0xff]  ;;  %v924_v33 = vld [vmem:[%s1272_s0 + $0xf0] sm:$0xff] }
   0xb   :  { %937 = vmatpush.bf16.msra.mxu3 %v926_v2  ;;  %936 = vmatpush.bf16.msra.mxu2 %v926_v2  ;;  %v915_v29 = vld [vmem:[%s1272_s0 + $0xa8] sm:$0xff]  ;;  %v902_v30 = vld [vmem:[%s1272_s0 + $0x40] sm:$0xff]  ;;  %v925_v42 = vld [vmem:[%s1272_s0 + $0xf8] sm:$0xff] }
   0xc   :  { %v910_v37 = vld [vmem:[%s1272_s0 + $0x80] sm:$0xff]  ;;  %v903_v39 = vld [vmem:[%s1272_s0 + $0x48] sm:$0xff] }
   0xd   :  { %862 = vmatmul.msk.bf16.vlgmr.msra.gmra.mxu0 %vm266_vm0, %v894_v3  ;;  %872 = vmatmul.msk.bf16.vlgmr.msra.gmra.mxu1 %vm266_vm0, %v904_v4 }
   0xe   :  { %884 = vmatmul.msk.bf16.vlgmr.msra.gmra.mxu3 %vm266_vm0, %v916_v5  ;;  %879 = vmatmul.msk.bf16.vlgmr.msra.gmra.mxu2 %vm266_vm0, %v911_v15 }
  0x1d   :  { %863 = vmatmul.msk.bf16.gmra.mxu0 %vm266_vm0, %v895_v6  ;;  %873 = vmatmul.msk.bf16.gmra.mxu1 %vm266_vm0, %v905_v7 }
  0x1e   :  { %885 = vmatmul.msk.bf16.gmra.mxu3 %vm266_vm0, %v917_v8  ;;  %880 = vmatmul.msk.bf16.gmra.mxu2 %vm266_vm0, %v912_v19 }
  0x2d   :  { %864 = vmatmul.msk.bf16.gmra.mxu0 %vm266_vm0, %v896_v9  ;;  %874 = vmatmul.msk.bf16.gmra.mxu1 %vm266_vm0, %v906_v10 }
  0x2e   :  { %886 = vmatmul.msk.bf16.gmra.mxu3 %vm266_vm0, %v918_v11  ;;  %881 = vmatmul.msk.bf16.gmra.mxu2 %vm266_vm0, %v913_v23 }
  0x3d   :  { %865 = vmatmul.msk.bf16.gmra.mxu0 %vm266_vm0, %v897_v12  ;;  %875 = vmatmul.msk.bf16.gmra.mxu1 %vm266_vm0, %v907_v13 }
  0x3e   :  { %887 = vmatmul.msk.bf16.gmra.mxu3 %vm266_vm0, %v919_v14  ;;  %882 = vmatmul.msk.bf16.gmra.mxu2 %vm266_vm0, %v914_v26 }
  0x4d   :  { %866 = vmatmul.msk.bf16.gmra.mxu0 %vm266_vm0, %v898_v16  ;;  %876 = vmatmul.msk.bf16.gmra.mxu1 %vm266_vm0, %v908_v17 }
  0x4e   :  { %888 = vmatmul.msk.bf16.gmra.mxu3 %vm266_vm0, %v920_v18  ;;  %883 = vmatmul.msk.bf16.gmra.mxu2 %vm266_vm0, %v915_v29 }
  0x5d   :  { %867 = vmatmul.msk.bf16.gmra.mxu0 %vm266_vm0, %v899_v20  ;;  %877 = vmatmul.msk.bf16.gmra.mxu1 %vm266_vm0, %v909_v21 }
  0x5e   :  { %889 = vmatmul.msk.bf16.gmra.mxu3 %vm266_vm0, %v921_v22 }
  0x6d   :  { %868 = vmatmul.msk.bf16.gmra.mxu0 %vm266_vm0, %v900_v24  ;;  %878 = vmatmul.msk.bf16.gmra.mxu1 %vm266_vm0, %v910_v37 }
  0x6e   :  { %890 = vmatmul.msk.bf16.gmra.mxu3 %vm266_vm0, %v922_v25 }
  0x7d   :  { %869 = vmatmul.msk.bf16.gmra.mxu0 %vm266_vm0, %v901_v27 }
  0x7e   :  { %891 = vmatmul.msk.bf16.gmra.mxu3 %vm266_vm0, %v923_v28 }
  0x8a   :  { %v1083_v31 = vpop.f32.mrf.mxu0  ;;  %v1085_v32 = vpop.f32.mrf.mxu1 }
  0x8b   :  { %v552_v25 = vmax.f32 %v1085_v32, 0.0 }
  0x8d   :  { %870 = vmatmul.msk.bf16.gmra.mxu0 %vm266_vm0, %v902_v30 }
  0x8e   :  { %892 = vmatmul.msk.bf16.gmra.mxu3 %vm266_vm0, %v924_v33 }
  0x91   :  { %v1092_v34 = vpop.f32.mrf.mxu3  ;;  %v1142_v0 = vpop.f32.mrf.mxu2 }
  0x92   :  { %v1094_v35 = vpop.f32.mrf.mxu0  ;;  %v1096_v36 = vpop.f32.mrf.mxu1 }
  0x93   :  { %v553_v24 = vmax.f32 %v1096_v36, 0.0 }
  0x99   :  { %v1101_v38 = vpop.f32.mrf.mxu3  ;;  %v1146_v4 = vpop.f32.mrf.mxu2 }
  0x9a   :  { %v1107_v40 = vpop.f32.mrf.mxu0  ;;  %v427_v41 = vpop.f32.mrf.mxu1 }
  0x9b   :  { %v554_v23 = vmax.f32 %v427_v41, 0.0 }
  0x9d   :  { %871 = vmatmul.msk.bf16.gmra.mxu0 %vm266_vm0, %v903_v39 }
  0x9e   :  { %893 = vmatmul.msk.bf16.gmra.mxu3 %vm266_vm0, %v925_v42 }
  0xa1   :  { %v1114_v43 = vpop.f32.mrf.mxu3  ;;  %v1152_v13 = vpop.f32.mrf.mxu2 }
  0xa2   :  { %v1116_v44 = vpop.f32.mrf.mxu0  ;;  %v429_v45 = vpop.f32.mrf.mxu1 }
  0xa3   :  { %v555_v21 = vmax.f32 %v429_v45, 0.0 }
  0xa9   :  { %v1118_v46 = vpop.f32.mrf.mxu3  ;;  %v1156_v22 = vpop.f32.mrf.mxu2 }
  0xaa   :  { %v1120_v47 = vpop.f32.mrf.mxu0  ;;  %v432_v48 = vpop.f32.mrf.mxu1 }
  0xab   :  { %v556_v18 = vmax.f32 %v432_v48, 0.0 }
  0xb1   :  { %v1122_v49 = vpop.f32.mrf.mxu3  ;;  %v1162_v28 = vpop.f32.mrf.mxu2 }
  0xb2   :  { %v1124_v50 = vpop.f32.mrf.mxu0  ;;  %v434_v51 = vpop.f32.mrf.mxu1 }
  0xb3   :  { %v557_v17 = vmax.f32 %v434_v51, 0.0 }
  0xb9   :  { %v1126_v52 = vpop.f32.mrf.mxu3  ;;  %v1166_v41 = vpop.f32.mrf.mxu2 }
  0xba   :  { %v1128_v53 = vpop.f32.mrf.mxu0  ;;  %v437_v54 = vpop.f32.mrf.mxu1 }
  0xbb   :  { %v558_v16 = vmax.f32 %v437_v54, 0.0 }
  0xc1   :  { %v1130_v55 = vpop.f32.mrf.mxu3 }
  0xc2   :  { %v1132_v56 = vpop.f32.mrf.mxu0  ;;  %v439_v57 = vpop.f32.mrf.mxu1 }
  0xc3   :  { %v559_v15 = vmax.f32 %v439_v57, 0.0 }
  0xc9   :  { %v1134_v58 = vpop.f32.mrf.mxu3 }
  0xca   :  { %v1136_v59 = vpop.f32.mrf.mxu0  ;;  %v442_v60 = vpop.f32.mrf.mxu1 }
  0xcb   :  { %v560_v11 = vmax.f32 %v442_v60, 0.0  ;;  %v540_v54 = vmax.f32 %v1136_v59, 0.0  ;;  %v1172_v60 = vpop.f32.mrf.mxu2  ;;  %v535_v59 = vmax.f32 %v1116_v44, 0.0 }
  0xd1   :  { %v1138_v61 = vpop.f32.mrf.mxu3 }
  0xd2   :  { %v1140_v62 = vpop.f32.mrf.mxu0  ;;  %v444_v63 = vpop.f32.mrf.mxu1 }
  0xd3   :  { %v561_v10 = vmax.f32 %v444_v63, 0.0  ;;  %v541_v51 = vmax.f32 %v1140_v62, 0.0 }
  0xd9   :  { %v1144_v1 = vpop.f32.mrf.mxu3 }
  0xda   :  { %v397_v2 = vpop.f32.mrf.mxu0  ;;  %v447_v3 = vpop.f32.mrf.mxu1 }
  0xdb   :  { %v562_v8 = vmax.f32 %v447_v3, 0.0  ;;  %v542_v48 = vmax.f32 %v397_v2, 0.0  ;;  %v539_v3 = vmax.f32 %v1132_v56, 0.0  ;;  %v536_v2 = vmax.f32 %v1120_v47, 0.0 }
  0xdc   :  { %v533_v56 = vmax.f32 %v1094_v35, 0.0  ;;  %v596_v35 = vld [vmem:[%s1273_s2] sm:$0xff] }
  0xe1   :  { %v1148_v5 = vpop.f32.mrf.mxu3 }
  0xe2   :  { %v399_v6 = vpop.f32.mrf.mxu0  ;;  %v449_v7 = vpop.f32.mrf.mxu1 }
  0xe3   :  { %v563_v9 = vmax.f32 %v449_v7, 0.0  ;;  %v543_v45 = vmax.f32 %v399_v6, 0.0  ;;  %v538_v7 = vmax.f32 %v1128_v53, 0.0  ;;  %v537_v6 = vmax.f32 %v1124_v50, 0.0 }
  0xe4   :  { %v532_v53 = vmax.f32 %v1083_v31, 0.0 }
  0xe5   :  { %620 = vmatpush.msrb.mxu2 %v563_v9  ;;  %v474_v9 = vpop.f32.mrf.mxu2 }
  0xe7   :  { %621 = vmatpush.msrb.mxu2 %v562_v8 }
  0xe9   :  { %v1150_v12 = vpop.f32.mrf.mxu3  ;;  %622 = vmatpush.msrb.mxu2 %v561_v10  ;;  %v534_v10 = vmax.f32 %v1107_v40, 0.0  ;;  %v579_v40 = vmax.f32 %v1118_v46, 0.0  ;;  %v576_v46 = vmax.f32 %v1092_v34, 0.0 }
  0xea   :  { %v402_v14 = vpop.f32.mrf.mxu0 }
  0xeb   :  { %623 = vmatpush.msrb.mxu2 %v560_v11  ;;  %v544_v36 = vmax.f32 %v402_v14, 0.0 }
  0xed   :  { %624 = vmatpush.msrb.mxu2 %v559_v15  ;;  %v477_v15 = vpop.f32.mrf.mxu2 }
  0xef   :  { %625 = vmatpush.msrb.mxu2 %v558_v16 }
  0xf1   :  { %v1154_v19 = vpop.f32.mrf.mxu3  ;;  %626 = vmatpush.msrb.mxu2 %v557_v17 }
  0xf2   :  { %v404_v20 = vpop.f32.mrf.mxu0  ;;  %v588_v34 = vmax.f32 %v1154_v19, 0.0  ;;  %v569_v19 = vmax.f32 %v1156_v22, 0.0  ;;  %v581_v22 = vmax.f32 %v1126_v52, 0.0  ;;  %v695_v52 = vld [vmem:[%s1274_s3 + $0x78] sm:$0xff] }
  0xf3   :  { %627 = vmatpush.msrb.mxu2 %v556_v18  ;;  %v545_v39 = vmax.f32 %v404_v20, 0.0  ;;  %v597_v20 = vld [vmem:[%s1273_s2 + $0x8] sm:$0xff] }
  0xf5   :  { %628 = vmatpush.msrb.mxu2 %v555_v21  ;;  %v578_v21 = vmax.f32 %v1114_v43, 0.0 }
  0xf7   :  { %629 = vmatpush.msrb.mxu2 %v554_v23  ;;  %v577_v23 = vmax.f32 %v1101_v38, 0.0 }
  0xf9   :  { %v1160_v26 = vpop.f32.mrf.mxu3  ;;  %630 = vmatpush.msrb.mxu2 %v553_v24 }
  0xfa   :  { %v407_v27 = vpop.f32.mrf.mxu0  ;;  %v589_v38 = vmax.f32 %v1160_v26, 0.0  ;;  %v570_v26 = vmax.f32 %v1162_v28, 0.0 }
  0xfb   :  { %631 = vmatpush.msrb.mxu2 %v552_v25  ;;  %v546_v37 = vmax.f32 %v407_v27, 0.0  ;;  %v479_v25 = vpop.f32.mrf.mxu2 }
 0x101   :  { %v1164_v29 = vpop.f32.mrf.mxu3 }
 0x102   :  { %v409_v30 = vpop.f32.mrf.mxu0  ;;  %v590_v43 = vmax.f32 %v1164_v29, 0.0  ;;  %v586_v29 = vmax.f32 %v1148_v5, 0.0  ;;  %v567_v5 = vmax.f32 %v1146_v4, 0.0  ;;  %v598_v4 = vld [vmem:[%s1273_s2 + $0x10] sm:$0xff] }
 0x103   :  { %v547_v33 = vmax.f32 %v409_v30, 0.0 }
 0x105   :  { %600 = vmatpush.msrb.mxu1 %v547_v33  ;;  %v575_v33 = vmax.f32 %v479_v25, 0.0 }
 0x107   :  { %601 = vmatpush.msrb.mxu1 %v546_v37  ;;  %v574_v37 = vmax.f32 %v477_v15, 0.0 }
 0x109   :  { %v1168_v42 = vpop.f32.mrf.mxu3  ;;  %602 = vmatpush.msrb.mxu1 %v545_v39  ;;  %v573_v39 = vmax.f32 %v474_v9, 0.0  ;;  %v682_v9 = vld [vmem:[%s1274_s3 + $0x10] sm:$0xff] }
 0x10a   :  { %v412_v32 = vpop.f32.mrf.mxu0  ;;  %v591_v30 = vmax.f32 %v1168_v42, 0.0  ;;  %v452_v42 = vpop.f32.mrf.mxu1 }
 0x10b   :  { %603 = vmatpush.msrb.mxu1 %v544_v36  ;;  %v548_v44 = vmax.f32 %v412_v32, 0.0  ;;  %v572_v36 = vmax.f32 %v1172_v60, 0.0  ;;  %v587_v32 = vmax.f32 %v1150_v12, 0.0  ;;  %v568_v12 = vmax.f32 %v1152_v13, 0.0  ;;  %v691_v60 = vld [vmem:[%s1274_s3 + $0x58] sm:$0xff] }
 0x10c   :  { %v580_v13 = vmax.f32 %v1122_v49, 0.0  ;;  %v694_v49 = vld [vmem:[%s1274_s3 + $0x70] sm:$0xff] }
 0x10d   :  { %604 = vmatpush.msrb.mxu1 %v543_v45  ;;  %v571_v45 = vmax.f32 %v1166_v41, 0.0  ;;  %v583_v41 = vmax.f32 %v1134_v58, 0.0  ;;  %v564_v58 = vmax.f32 %v452_v42, 0.0 }
 0x10f   :  { %605 = vmatpush.msrb.mxu1 %v542_v48  ;;  %v585_v48 = vmax.f32 %v1144_v1, 0.0  ;;  %v566_v1 = vmax.f32 %v1142_v0, 0.0  ;;  %v693_v0 = vld [vmem:[%s1274_s3 + $0x68] sm:$0xff] }
 0x111   :  { %v522_v57 = vpop.f32.mrf.mxu3  ;;  %606 = vmatpush.msrb.mxu1 %v541_v51  ;;  %v584_v51 = vmax.f32 %v1138_v61, 0.0 }
 0x112   :  { %v414_v63 = vpop.f32.mrf.mxu0  ;;  %v592_v27 = vmax.f32 %v522_v57, 0.0  ;;  %v454_v28 = vpop.f32.mrf.mxu1  ;;  %v692_v57 = vld [vmem:[%s1274_s3 + $0x60] sm:$0xff] }
 0x113   :  { %607 = vmatpush.msrb.mxu1 %v540_v54  ;;  %v549_v16 = vmax.f32 %v414_v63, 0.0  ;;  %v582_v54 = vmax.f32 %v1130_v55, 0.0  ;;  %v565_v61 = vmax.f32 %v454_v28, 0.0  ;;  %v599_v55 = vld [vmem:[%s1273_s2 + $0x18] sm:$0xff]  ;;  %v690_v63 = vld [vmem:[%s1274_s3 + $0x50] sm:$0xff] }
 0x115   :  { %608 = vmatpush.msrb.mxu1 %v539_v3  ;;  %v689_v3 = vld [vmem:[%s1274_s3 + $0x48] sm:$0xff] }
 0x117   :  { %609 = vmatpush.msrb.mxu1 %v538_v7  ;;  %v688_v7 = vld [vmem:[%s1274_s3 + $0x40] sm:$0xff] }
 0x119   :  { %v524_v62 = vpop.f32.mrf.mxu3  ;;  %610 = vmatpush.msrb.mxu1 %v537_v6  ;;  %v687_v6 = vld [vmem:[%s1274_s3 + $0x38] sm:$0xff] }
 0x11a   :  { %v417_v8 = vpop.f32.mrf.mxu0  ;;  %v593_v24 = vmax.f32 %v524_v62, 0.0  ;;  %v685_v62 = vld [vmem:[%s1274_s3 + $0x28] sm:$0xff] }
 0x11b   :  { %611 = vmatpush.msrb.mxu1 %v536_v2  ;;  %v550_v47 = vmax.f32 %v417_v8, 0.0  ;;  %v686_v2 = vld [vmem:[%s1274_s3 + $0x30] sm:$0xff]  ;;  %v684_v8 = vld [vmem:[%s1274_s3 + $0x20] sm:$0xff] }
 0x11d   :  { %612 = vmatpush.msrb.mxu1 %v535_v59  ;;  %v683_v59 = vld [vmem:[%s1274_s3 + $0x18] sm:$0xff] }
 0x11f   :  { %613 = vmatpush.msrb.mxu1 %v534_v10  ;;  %v681_v10 = vld [vmem:[%s1274_s3 + $0x8] sm:$0xff] }
 0x121   :  { %v527_v11 = vpop.f32.mrf.mxu3  ;;  %614 = vmatpush.msrb.mxu1 %v533_v56  ;;  %v680_v56 = vld [vmem:[%s1274_s3] sm:$0xff] }
 0x122   :  { %v419_v50 = vpop.f32.mrf.mxu0  ;;  %v594_v31 = vmax.f32 %v527_v11, 0.0 }
 0x123   :  { %v551_v14 = vmax.f32 %v419_v50, 0.0  ;;  %615 = vmatpush.msrb.mxu1 %v532_v53 }
 0x124   :  { %616 = vmatmul.f32.vlgmr.msrb.gmra.mxu1 %v596_v35 }
 0x125   :  { %632 = vmatpush.msrb.mxu2 %v551_v14 }
 0x127   :  { %633 = vmatpush.msrb.mxu2 %v550_v47 }
 0x129   :  { %v529_v17 = vpop.f32.mrf.mxu3  ;;  %634 = vmatpush.msrb.mxu2 %v549_v16 }
 0x12a   :  { %v595_v18 = vmax.f32 %v529_v17, 0.0 }
 0x12b   :  { %635 = vmatpush.msrb.mxu2 %v548_v44  ;;  %v696_v44 = vld [vmem:[%s1274_s3 + $0x80] sm:$0xff] }
 0x12c   :  { %660 = vmatpush.msra.mxu1 %v595_v18  ;;  %636 = vmatmul.f32.vlgmr.msrb.gmra.mxu2 %v597_v20 }
 0x12d   :  { %640 = vmatpush.msra.mxu2 %v579_v40 }
 0x12e   :  { %661 = vmatpush.msra.mxu1 %v594_v31 }
 0x12f   :  { %641 = vmatpush.msra.mxu2 %v578_v21 }
 0x130   :  { %662 = vmatpush.msra.mxu1 %v593_v24 }
 0x131   :  { %642 = vmatpush.msra.mxu2 %v577_v23 }
 0x132   :  { %663 = vmatpush.msra.mxu1 %v592_v27 }
 0x133   :  { %643 = vmatpush.msra.mxu2 %v576_v46 }
 0x134   :  { %664 = vmatpush.msra.mxu1 %v591_v30 }
 0x135   :  { %644 = vmatpush.msra.mxu2 %v575_v33 }
 0x136   :  { %665 = vmatpush.msra.mxu1 %v590_v43 }
 0x137   :  { %645 = vmatpush.msra.mxu2 %v574_v37 }
 0x138   :  { %666 = vmatpush.msra.mxu1 %v589_v38 }
 0x139   :  { %646 = vmatpush.msra.mxu2 %v573_v39 }
 0x13a   :  { %667 = vmatpush.msra.mxu1 %v588_v34 }
 0x13b   :  { %647 = vmatpush.msra.mxu2 %v572_v36 }
 0x13c   :  { %668 = vmatpush.msra.mxu1 %v587_v32 }
 0x13d   :  { %648 = vmatpush.msra.mxu2 %v571_v45 }
 0x13e   :  { %669 = vmatpush.msra.mxu1 %v586_v29 }
 0x13f   :  { %649 = vmatpush.msra.mxu2 %v570_v26 }
 0x140   :  { %670 = vmatpush.msra.mxu1 %v585_v48 }
 0x141   :  { %650 = vmatpush.msra.mxu2 %v569_v19 }
 0x142   :  { %671 = vmatpush.msra.mxu1 %v584_v51 }
 0x143   :  { %651 = vmatpush.msra.mxu2 %v568_v12 }
 0x144   :  { %672 = vmatpush.msra.mxu1 %v583_v41 }
 0x145   :  { %652 = vmatpush.msra.mxu2 %v567_v5 }
 0x146   :  { %673 = vmatpush.msra.mxu1 %v582_v54 }
 0x147   :  { %653 = vmatpush.msra.mxu2 %v566_v1 }
 0x148   :  { %674 = vmatpush.msra.mxu1 %v581_v22 }
 0x149   :  { %654 = vmatpush.msra.mxu2 %v565_v61 }
 0x14a   :  { %675 = vmatpush.msra.mxu1 %v580_v13 }
 0x14b   :  { %655 = vmatpush.msra.mxu2 %v564_v58  ;;  %676 = vmatmul.f32.vlgmr.msra.gmra.mxu1 %v599_v55 }
 0x14c   :  { %656 = vmatmul.f32.vlgmr.msra.gmra.mxu2 %v598_v4 }
 0x14d   :  { %697 = vmatpush.msrb.mxu2 %v695_v52 }
 0x14f   :  { %698 = vmatpush.msrb.mxu2 %v694_v49 }
 0x151   :  { %699 = vmatpush.msrb.mxu2 %v693_v0 }
 0x153   :  { %700 = vmatpush.msrb.mxu2 %v692_v57 }
 0x155   :  { %701 = vmatpush.msrb.mxu2 %v691_v60 }
 0x157   :  { %702 = vmatpush.msrb.mxu2 %v690_v63 }
 0x159   :  { %703 = vmatpush.msrb.mxu2 %v689_v3 }
 0x15b   :  { %704 = vmatpush.msrb.mxu2 %v688_v7 }
 0x15d   :  { %705 = vmatpush.msrb.mxu2 %v687_v6 }
 0x15f   :  { %706 = vmatpush.msrb.mxu2 %v686_v2 }
 0x161   :  { %707 = vmatpush.msrb.mxu2 %v685_v62 }
 0x163   :  { %708 = vmatpush.msrb.mxu2 %v684_v8 }
 0x165   :  { %709 = vmatpush.msrb.mxu2 %v683_v59 }
 0x167   :  { %710 = vmatpush.msrb.mxu2 %v682_v9 }
 0x169   :  { %711 = vmatpush.msrb.mxu2 %v681_v10 }
 0x16b   :  { %712 = vmatpush.msrb.mxu2 %v680_v56 }
 0x1a1   :  { %v617_v11 = vpop.f32.mrf.mxu1 }
 0x1af   :  { %v637_v53 = vpop.f32.mrf.mxu2 }
 0x1b0   :  { %v638_v50 = vadd.f32 %v637_v53, %v617_v11 }
 0x1c8   :  { %v677_v47 = vpop.f32.mrf.mxu1 }
 0x1cf   :  { %v657_v14 = vpop.f32.mrf.mxu2 }
 0x1d0   :  { %v658_v15 = vadd.f32 %v657_v14, %v638_v50 }
 0x1d2   :  { %v678_v16 = vadd.f32 %v677_v47, %v658_v15 }
 0x1d4   :  { %713 = vmatmul.f32.vlgmr.msrb.gmra.mxu2 %v678_v16 }
 0x257   :  { %v714_v17 = vpop.f32.mrf.mxu2 }
 0x258   :  { %v715_v35 = vadd.f32 %v714_v17, %v696_v44 }
 0x25a   :  { %717 = vst [vmem:[%s1275_s4] sm:$0xff] %v715_v35 }

</bundles_post_ra>
